<compile_context>
chip_gen: v5e
topology: v5e:2x2
jax: 0.10.0
libtpu: 0.0.40
codegen_flags: <defaults>
</compile_context>

<pallas_src>
import jax
import jax.numpy as jnp
from jax.experimental import pallas as pl
from jax.experimental.pallas import tpu as pltpu


# ---------------------------------------------------------------------------
# Kernel: T LSTM steps + fc_out + sigmoid + affine clamp, fully in VMEM.
#   x_ref    : (T*B, D)   time-major-flattened inputs
#   h0_ref   : (B, H)     initial hidden state
#   c0_ref   : (B, H)     initial cell state
#   wih_ref  : (D, 4H)    W_ih^T
#   whh_ref  : (H, 4H)    W_hh^T
#   b_ref    : (1, 4H)    b_ih + b_hh
#   wfc_ref  : (H, D)     W_fc^T
#   bfc_ref  : (1, D)     b_fc
#   pred_ref : (B, T*D)   lane-dense predictions (step t in lanes [t*D,(t+1)*D))
#   hout_ref : (B, H)     final hidden state (aliased onto h0)
#   cout_ref : (B, H)     final cell state   (aliased onto c0)
# ---------------------------------------------------------------------------
def _seq_kernel(x_ref, h0_ref, c0_ref, wih_ref, whh_ref, b_ref, wfc_ref, bfc_ref,
                pred_ref, hout_ref, cout_ref):
    B, H = h0_ref.shape
    D = wfc_ref.shape[1]
    T = x_ref.shape[0] // B

    # One MXU push for the input projection of ALL T steps, bias fused once.
    xg_all = (jnp.dot(x_ref[...].astype(jnp.float32), wih_ref[...],
                      preferred_element_type=jnp.float32)
              + b_ref[...])                                      # (T*B, 4H)

    whh = whh_ref[...]                                           # (H, 4H)
    wfc = wfc_ref[...]                                           # (H, D)
    bfc = jnp.broadcast_to(bfc_ref[...], (B, D))                 # hoisted broadcast

    h = h0_ref[...].astype(jnp.float32)
    c = c0_ref[...].astype(jnp.float32)

    # Fully unrolled time loop: T is tiny and static, so static slice indices
    # everywhere (no dynamic lane/sublane offsets) and the LLO scheduler sees
    # all T steps at once for cross-step EUP/MXU/VALU overlap.
    for t in range(T):
        gates = xg_all[t * B:(t + 1) * B, :] + jnp.dot(
            h, whh, preferred_element_type=jnp.float32)          # (B, 4H)

        sg = jax.nn.sigmoid(gates)   # one full-vreg EUP pass -> i, f, o gates
        tg = jnp.tanh(gates)         # one full-vreg EUP pass -> g gate
        i_g = sg[:, 0 * H:1 * H]
        f_g = sg[:, 1 * H:2 * H]
        o_g = sg[:, 3 * H:4 * H]
        g_g = tg[:, 2 * H:3 * H]

        c = f_g * c + i_g * g_g
        h = o_g * jnp.tanh(c)

        logits = jnp.dot(h, wfc, preferred_element_type=jnp.float32) + bfc
        p = jax.nn.sigmoid(logits)
        p = (p - 0.5) * 0.999999 + 0.5

        # Lane-dense accumulation -> single dense HBM writeback at kernel end.
        pred_ref[:, t * D:(t + 1) * D] = p.astype(pred_ref.dtype)

    hout_ref[...] = h.astype(hout_ref.dtype)
    cout_ref[...] = c.astype(cout_ref.dtype)


# ---------------------------------------------------------------------------
# Parameter prep: done ONCE, outside the per-call path.
# ---------------------------------------------------------------------------
def prepare_params(params):
    H = params["w_hh"].shape[-1]
    D = params["w_ih"].shape[-1]
    return {
        "wih_t": jnp.asarray(params["w_ih"].T, jnp.float32),                   # (D, 4H)
        "whh_t": jnp.asarray(params["w_hh"].T, jnp.float32),                   # (H, 4H)
        "b": jnp.asarray(params["b_ih"] + params["b_hh"],
                         jnp.float32).reshape(1, 4 * H),                        # (1, 4H)
        "wfc_t": jnp.asarray(params["w_fc"].T, jnp.float32),                   # (H, D)
        "bfc": jnp.asarray(params["b_fc"], jnp.float32).reshape(1, D),          # (1, D)
    }


# ---------------------------------------------------------------------------
# Single gridless pallas_call: everything resident in VMEM for the whole call.
# ---------------------------------------------------------------------------
def _run_kernel(x2d, h0, c0, p):
    TB, D = x2d.shape
    B, H = h0.shape
    T = TB // B
    vmem = pl.BlockSpec(memory_space=pltpu.MemorySpace.VMEM)
    return pl.pallas_call(
        _seq_kernel,
        out_shape=(
            jax.ShapeDtypeStruct((B, T * D), jnp.float32),   # lane-dense preds
            jax.ShapeDtypeStruct((B, H), jnp.float32),       # final h
            jax.ShapeDtypeStruct((B, H), jnp.float32),       # final c
        ),
        in_specs=[vmem] * 8,
        out_specs=(vmem, vmem, vmem),
        # In-place recurrent-state update: h0 -> hout, c0 -> cout.
        input_output_aliases={1: 1, 2: 2},
    )(x2d, h0, c0, p["wih_t"], p["whh_t"], p["b"], p["wfc_t"], p["bfc"])


# ---------------------------------------------------------------------------
# Wrappers
# ---------------------------------------------------------------------------
@jax.jit
def solver_forward(x, hidden, cell, prepared):
    """Exactly one Solver.forward step.
    x: (B, D); hidden, cell: (n_layers=1, B, H).
    Returns (pred (B, D), hidden (1, B, H), cell (1, B, H))."""
    pred, h_new, c_new = _run_kernel(x, hidden[0], cell[0], prepared)
    return pred, h_new[None, ...], c_new[None, ...]


@jax.jit
def solver_forward_seq(x_seq, hidden, cell, prepared):
    """T Solver.forward steps inside ONE pallas_call (preferred for sequences;
    do not drive solver_forward from an outer loop).
    x_seq: (T, B, D); hidden, cell: (1, B, H).
    Returns (pred_seq (T, B, D), hidden (1, B, H), cell (1, B, H))."""
    T, B, D = x_seq.shape
    x2d = x_seq.reshape(T * B, D)                      # layout-preserving reshape
    pred_flat, h_new, c_new = _run_kernel(x2d, hidden[0], cell[0], prepared)
    pred_seq = pred_flat.reshape(B, T, D).transpose(1, 0, 2)   # layout plumbing only
    return pred_seq, h_new[None, ...], c_new[None, ...]


# ---------------------------------------------------------------------------
# Pure-JAX reference (mirrors torch.nn.LSTM single step + Linear + sigmoid).
# ---------------------------------------------------------------------------
def solver_reference(x, hidden, cell, params):
    h0, c0 = hidden[0], cell[0]
    H = h0.shape[-1]
    gates = x @ params["w_ih"].T + params["b_ih"] + h0 @ params["w_hh"].T + params["b_hh"]
    i_g = jax.nn.sigmoid(gates[:, 0 * H:1 * H])
    f_g = jax.nn.sigmoid(gates[:, 1 * H:2 * H])
    g_g = jnp.tanh(gates[:, 2 * H:3 * H])
    o_g = jax.nn.sigmoid(gates[:, 3 * H:4 * H])
    c_new = f_g * c0 + i_g * g_g
    h_new = o_g * jnp.tanh(c_new)
    pred = jax.nn.sigmoid(h_new @ params["w_fc"].T + params["b_fc"])
    pred = (pred - 0.5) * 0.999999 + 0.5
    return pred, h_new[None, ...], c_new[None, ...]


if __name__ == "__main__":
    # Small synthetic shapes consistent with the module:
    #   NUM_NODES (input_dim) = 16, hidden_dim = 32, batch = 4, n_layers = 1, T = 8.
    B, D, H, T = 4, 16, 32, 8

    key = jax.random.PRNGKey(0)
    ks = jax.random.split(key, 10)
    bound = 1.0 / jnp.sqrt(H)   # PyTorch-style uniform init range

    params = {
        "w_ih": jax.random.uniform(ks[0], (4 * H, D), jnp.float32, -bound, bound),
        "w_hh": jax.random.uniform(ks[1], (4 * H, H), jnp.float32, -bound, bound),
        "b_ih": jax.random.uniform(ks[2], (4 * H,), jnp.float32, -bound, bound),
        "b_hh": jax.random.uniform(ks[3], (4 * H,), jnp.float32, -bound, bound),
        "w_fc": jax.random.uniform(ks[4], (D, H), jnp.float32, -bound, bound),
        "b_fc": jax.random.uniform(ks[5], (D,), jnp.float32, -bound, bound),
    }
    prepared = prepare_params(params)   # weight transposes hoisted out of the call path

    x = jax.random.normal(ks[6], (B, D), jnp.float32)
    hidden = jax.random.normal(ks[7], (1, B, H), jnp.float32)
    cell = jax.random.normal(ks[8], (1, B, H), jnp.float32)
    x_seq = jax.random.normal(ks[9], (T, B, D), jnp.float32)

    # --- single step (exact Solver.forward) ---
    pred, h_new, c_new = solver_forward(x, hidden, cell, prepared)
    jax.block_until_ready((pred, h_new, c_new))

    pred_r, h_r, c_r = solver_reference(x, hidden, cell, params)
    assert pred.shape == (B, D) and h_new.shape == (1, B, H) and c_new.shape == (1, B, H)
    assert jnp.allclose(pred, pred_r, atol=1e-5)
    assert jnp.allclose(h_new, h_r, atol=1e-5)
    assert jnp.allclose(c_new, c_r, atol=1e-5)

    # --- T steps internalized into one gridless pallas_call ---
    pred_seq, h_T, c_T = solver_forward_seq(x_seq, hidden, cell, prepared)
    jax.block_until_ready((pred_seq, h_T, c_T))

    h_ref_t, c_ref_t = hidden, cell
    preds_ref = []
    for t in range(T):
        p_t, h_ref_t, c_ref_t = solver_reference(x_seq[t], h_ref_t, c_ref_t, params)
        preds_ref.append(p_t)
    preds_ref = jnp.stack(preds_ref, axis=0)
    assert pred_seq.shape == (T, B, D)
    assert jnp.allclose(pred_seq, preds_ref, atol=1e-4)
    assert jnp.allclose(h_T, h_ref_t, atol=1e-4)
    assert jnp.allclose(c_T, c_ref_t, atol=1e-4)

    print("KERNEL_OK")
</pallas_src>

<mosaic_0001>
module attributes {stable_mosaic.version = 11 : i64} {
  func.func @_seq_kernel(%arg0: memref<4x16xf32, #tpu.memory_space<vmem>>, %arg1: memref<4x32xf32, #tpu.memory_space<vmem>>, %arg2: memref<4x32xf32, #tpu.memory_space<vmem>>, %arg3: memref<16x128xf32, #tpu.memory_space<vmem>>, %arg4: memref<32x128xf32, #tpu.memory_space<vmem>>, %arg5: memref<1x128xf32, #tpu.memory_space<vmem>>, %arg6: memref<32x16xf32, #tpu.memory_space<vmem>>, %arg7: memref<1x16xf32, #tpu.memory_space<vmem>>, %arg8: memref<4x16xf32, #tpu.memory_space<vmem>>, %arg9: memref<4x32xf32, #tpu.memory_space<vmem>>, %arg10: memref<4x32xf32, #tpu.memory_space<vmem>>) attributes {dimension_semantics = [], scalar_prefetch = 0 : i64, scratch_operands = 0 : i64, tpu.core_type = #tpu.core_type<tc>} {
    %c0 = arith.constant 0 : index
    %c0_0 = arith.constant 0 : index
    %0 = vector.load %arg0[%c0, %c0_0] : memref<4x16xf32, #tpu.memory_space<vmem>>, vector<4x16xf32>
    %c0_1 = arith.constant 0 : index
    %c0_2 = arith.constant 0 : index
    %1 = vector.load %arg3[%c0_1, %c0_2] : memref<16x128xf32, #tpu.memory_space<vmem>>, vector<16x128xf32>
    %cst = arith.constant dense<0.000000e+00> : vector<4x128xf32>
    %2 = tpu.matmul %0, %1, %cst {dimension_numbers = #tpu.dot_dimension_numbers<[1], [0], [0], [1], [0, 0, 1, 1], [], []>} : vector<4x16xf32>, vector<16x128xf32>, vector<4x128xf32> -> vector<4x128xf32>
    %c0_3 = arith.constant 0 : index
    %c0_4 = arith.constant 0 : index
    %3 = vector.load %arg5[%c0_3, %c0_4] : memref<1x128xf32, #tpu.memory_space<vmem>>, vector<1x128xf32>
    %4 = vector.broadcast %3 : vector<1x128xf32> to vector<4x128xf32>
    %5 = arith.addf %2, %4 : vector<4x128xf32>
    %c0_5 = arith.constant 0 : index
    %c0_6 = arith.constant 0 : index
    %6 = vector.load %arg4[%c0_5, %c0_6] : memref<32x128xf32, #tpu.memory_space<vmem>>, vector<32x128xf32>
    %c0_7 = arith.constant 0 : index
    %c0_8 = arith.constant 0 : index
    %7 = vector.load %arg6[%c0_7, %c0_8] : memref<32x16xf32, #tpu.memory_space<vmem>>, vector<32x16xf32>
    %c0_9 = arith.constant 0 : index
    %c0_10 = arith.constant 0 : index
    %8 = vector.load %arg7[%c0_9, %c0_10] : memref<1x16xf32, #tpu.memory_space<vmem>>, vector<1x16xf32>
    %9 = vector.shape_cast %8 : vector<1x16xf32> to vector<1x16xf32>
    %10 = vector.broadcast %9 : vector<1x16xf32> to vector<4x16xf32>
    %c0_11 = arith.constant 0 : index
    %c0_12 = arith.constant 0 : index
    %11 = vector.load %arg1[%c0_11, %c0_12] : memref<4x32xf32, #tpu.memory_space<vmem>>, vector<4x32xf32>
    %c0_13 = arith.constant 0 : index
    %c0_14 = arith.constant 0 : index
    %12 = vector.load %arg2[%c0_13, %c0_14] : memref<4x32xf32, #tpu.memory_space<vmem>>, vector<4x32xf32>
    %cst_15 = arith.constant dense<0.000000e+00> : vector<4x128xf32>
    %13 = tpu.matmul %11, %6, %cst_15 {dimension_numbers = #tpu.dot_dimension_numbers<[1], [0], [0], [1], [0, 0, 1, 1], [], []>} : vector<4x32xf32>, vector<32x128xf32>, vector<4x128xf32> -> vector<4x128xf32>
    %14 = arith.addf %5, %13 : vector<4x128xf32>
    %15 = arith.negf %14 : vector<4x128xf32>
    %16 = math.exp %15 : vector<4x128xf32>
    %cst_16 = arith.constant 1.000000e+00 : f32
    %17 = vector.broadcast %cst_16 : f32 to vector<4x128xf32>
    %18 = arith.addf %17, %16 : vector<4x128xf32>
    %19 = arith.divf %17, %18 : vector<4x128xf32>
    %20 = math.tanh %14 : vector<4x128xf32>
    %21 = vector.extract_strided_slice %19 {offsets = [0, 0], sizes = [4, 32], strides = [1, 1]} : vector<4x128xf32> to vector<4x32xf32>
    %22 = vector.extract_strided_slice %19 {offsets = [0, 32], sizes = [4, 32], strides = [1, 1]} : vector<4x128xf32> to vector<4x32xf32>
    %23 = vector.extract_strided_slice %19 {offsets = [0, 96], sizes = [4, 32], strides = [1, 1]} : vector<4x128xf32> to vector<4x32xf32>
    %24 = vector.extract_strided_slice %20 {offsets = [0, 64], sizes = [4, 32], strides = [1, 1]} : vector<4x128xf32> to vector<4x32xf32>
    %25 = arith.mulf %22, %12 : vector<4x32xf32>
    %26 = arith.mulf %21, %24 : vector<4x32xf32>
    %27 = arith.addf %25, %26 : vector<4x32xf32>
    %28 = math.tanh %27 : vector<4x32xf32>
    %29 = arith.mulf %23, %28 : vector<4x32xf32>
    %cst_17 = arith.constant dense<0.000000e+00> : vector<4x16xf32>
    %30 = tpu.matmul %29, %7, %cst_17 {dimension_numbers = #tpu.dot_dimension_numbers<[1], [0], [0], [1], [0, 0, 1, 1], [], []>} : vector<4x32xf32>, vector<32x16xf32>, vector<4x16xf32> -> vector<4x16xf32>
    %31 = arith.addf %30, %10 : vector<4x16xf32>
    %32 = arith.negf %31 : vector<4x16xf32>
    %33 = math.exp %32 : vector<4x16xf32>
    %cst_18 = arith.constant 1.000000e+00 : f32
    %34 = vector.broadcast %cst_18 : f32 to vector<4x16xf32>
    %35 = arith.addf %34, %33 : vector<4x16xf32>
    %36 = arith.divf %34, %35 : vector<4x16xf32>
    %cst_19 = arith.constant 5.000000e-01 : f32
    %37 = vector.broadcast %cst_19 : f32 to vector<4x16xf32>
    %38 = arith.subf %36, %37 : vector<4x16xf32>
    %cst_20 = arith.constant 0.999998986 : f32
    %39 = vector.broadcast %cst_20 : f32 to vector<4x16xf32>
    %40 = arith.mulf %38, %39 : vector<4x16xf32>
    %cst_21 = arith.constant 5.000000e-01 : f32
    %41 = vector.broadcast %cst_21 : f32 to vector<4x16xf32>
    %42 = arith.addf %40, %41 : vector<4x16xf32>
    %c0_22 = arith.constant 0 : index
    %c0_23 = arith.constant 0 : index
    %43 = vector.load %arg8[%c0_22, %c0_23] : memref<4x16xf32, #tpu.memory_space<vmem>>, vector<4x16xf32>
    tpu.vector_store %arg8[%c0_22, %c0_23], %42 {strides = array<i32>} : memref<4x16xf32, #tpu.memory_space<vmem>>, vector<4x16xf32>,
    %c0_24 = arith.constant 0 : index
    %c0_25 = arith.constant 0 : index
    %44 = vector.load %arg9[%c0_24, %c0_25] : memref<4x32xf32, #tpu.memory_space<vmem>>, vector<4x32xf32>
    tpu.vector_store %arg9[%c0_24, %c0_25], %29 {strides = array<i32>} : memref<4x32xf32, #tpu.memory_space<vmem>>, vector<4x32xf32>,
    %c0_26 = arith.constant 0 : index
    %c0_27 = arith.constant 0 : index
    %45 = vector.load %arg10[%c0_26, %c0_27] : memref<4x32xf32, #tpu.memory_space<vmem>>, vector<4x32xf32>
    tpu.vector_store %arg10[%c0_26, %c0_27], %27 {strides = array<i32>} : memref<4x32xf32, #tpu.memory_space<vmem>>, vector<4x32xf32>,
    return
  }
}

</mosaic_0001>

<bundles_post_ra>
// kernel: solver_forward.1
= control target key start
LH: loop header
LB: loop body
LE: loop exit
PB: predicated region body
PF: predicated region fallthrough
CT: control target
= control target key end

     0   :  { %16 = vsyncpa [#allocation3], 0  ;;  %s441_s0 = inlined_call_operand.vmem [shape: f32[4,16], index: 0, kind: input, shape index: {}]   ;;  %s442_s1 = inlined_call_operand.vmem [shape: f32[4,32], index: 1, kind: input, shape index: {}, may-alias: {1,9}]   ;;  %s443_s2 = inlined_call_operand.vmem [shape: f32[4,32], index: 2, kind: input, shape index: {}, may-alias: {2,10}]   ;;  %s444_s3 = inlined_call_operand.hbm [shape: f32[16,128], index: 3, kind: input, shape index: {}]   ;;  %s445_s4 = inlined_call_operand.vmem [shape: f32[32,128], index: 4, kind: input, shape index: {}]   ;;  %s446_s5 = inlined_call_operand.vmem [shape: f32[1,128], index: 5, kind: input, shape index: {}]   ;;  %s447_s6 = inlined_call_operand.vmem [shape: f32[32,16], index: 6, kind: input, shape index: {}]   ;;  %s448_s7 = inlined_call_operand.vmem [shape: f32[1,16], index: 7, kind: input, shape index: {}]   ;;  %s449_s8 = inlined_call_operand.hbm [shape: f32[4,16], index: 8, kind: output, shape index: {0}]   ;;  %s450_s9 = inlined_call_operand.vmem [shape: f32[4,32], index: 9, kind: output, shape index: {1}, may-alias: {1,9}]   ;;  %s451_s10 = inlined_call_operand.vmem [shape: f32[4,32], index: 10, kind: output, shape index: {2}, may-alias: {2,10}]  }
   0x1   :  { %17 = vsyncpa [#allocation4], 0  ;;  %s28_s15 = sshll.u32 %s444_s3, 4  ;;  %s321_s16 = smov [#allocation2]   ;;  %s29_s15 = int_to_ptr.hbm [resolvable:$true] %s28_s15 }
   0x2   :  { %s30_s17 = sshll.u32 %s321_s16, 4  ;;  %s322_s18 = smov 128   ;;  %s31_s17 = int_to_ptr.vmem [resolvable:$true] %s30_s17 }
   0x3   :  { %s323_s19 = smov 8  }
   0x4   :  { %36 = dma.hbm_to_vmem [thread:$0]  %s29_s15, 256, %s31_s17, [#allocation3], %s322_s18, %s322_s18, %s323_s19  }
   0x5   :  { %317 = dma.done.wait [#allocation3], 256  }
   0x6   :  { %318 = vsyncadd [#allocation3], 4294967040  ;;  %v83_v0 = vld [vmem:[%s445_s4 + $0x18] sm:$0xff]  ;;  %v51_v1 = vld [vmem:[#allocation2 + $0x8] sm:$0xff]  ;;  %vm56_vm0 = vcmask 130048   ;;  %vm94_vm1 = vcmask 261120  }
   0x7   :  { %v82_v2 = vld [vmem:[%s445_s4 + $0x10] sm:$0xff]  ;;  %110 = vmatpush.msra.mxu1 %v83_v0  ;;  %74 = vmatpush.msra.mxu0 %v51_v1  ;;  %v50_v3 = vld [vmem:[#allocation2] sm:$0xff]  ;;  %v81_v5 = vld [vmem:[%s445_s4 + $0x8] sm:$0xff]  ;;  %s326_s20 = smov 96   ;;  %vm210_vm6 = vcmask 257024   ;;  %s224_s26 = sshll.u32 %s449_s8, 4  ;;  %s225_s26 = int_to_ptr.hbm [resolvable:$true] %s224_s26 }
   0x8   :  { %v49_v4 = vld [vmem:[%s441_s0] sm:$0xf]  ;;  %v87_v35 = vld [vmem:[%s447_s6 + $0x18] sm:$0xff]  ;;  %v86_v36 = vld [vmem:[%s447_s6 + $0x10] sm:$0xff]  ;;  %vm207_vm11 = vcmask 125952  }
   0x9   :  { %111 = vmatpush.msra.mxu1 %v82_v2  ;;  %75 = vmatpush.msra.mxu0 %v50_v3  ;;  %v80_v6 = vld [vmem:[%s445_s4] sm:$0xff]  ;;  %s324_s4 = smov 64   ;;  %v85_v37 = vld [vmem:[%s447_s6 + $0x8] sm:$0xff] }
   0xa   :  { %242 = vmatmul.msk.f32.vlgmr.msra.gmra.mxu0 %vm56_vm0, %v49_v4  ;;  %v92_v7 = vld [vmem:[%s442_s1] sm:$0xf]  ;;  %s325_s1 = smov 32   ;;  %177 = vmatpush.msra.mxu2 %v87_v35 }
   0xb   :  { %112 = vmatpush.msra.mxu1 %v81_v5  ;;  %v255_v8 = vld [vmem:[%s446_s5] ss:$0 sm:$0xff] }
   0xc   :  { %v93_v14 = vld [vmem:[%s443_s2] sm:$0xf]  ;;  %178 = vmatpush.msra.mxu2 %v86_v36 }
   0xd   :  { %113 = vmatpush.msra.mxu1 %v80_v6  ;;  %v84_v38 = vld [vmem:[%s447_s6] sm:$0xff] }
   0xe   :  { %243 = vmatmul.msk.f32.vlgmr.msra.gmra.mxu1 %vm94_vm1, %v92_v7  ;;  %179 = vmatpush.msra.mxu2 %v85_v37  ;;  %v256_v43 = vld [vmem:[%s448_s7] ss:$0 sm:$0xff]  ;;  %s327_s7 = smov [#allocation5]  }
  0x10   :  { %180 = vmatpush.msra.mxu2 %v84_v38 }
  0x87   :  { %v77_v9 = vpop.f32.mrf.mxu0 }
  0x88   :  { %v78_v10 = vadd.f32 %v255_v8, %v77_v9 }
  0x8b   :  { %v115_v11 = vpop.f32.mrf.mxu1 }
  0x8c   :  { %v118_v12 = vadd.f32 %v115_v11, %v78_v10 }
  0x8e   :  { %257 = vtanh.f32 %v118_v12  ;;  %v244_v15 = vmul.f32 -1.442695, %v118_v12 }
  0x90   :  { %259 = vpow2.f32 %v244_v15 }
  0x94   :  { %v258_v13 = vpop.eup %257 }
  0x95   :  { %145 = vrot.lane.b32.xlu0 %v258_v13, %s324_s4 }
  0x96   :  { %v260_v16 = vpop.eup %259 }
  0x97   :  { %v122_v17 = vadd.f32 1.0, %v260_v16 }
  0x99   :  { %261 = vrcp.f32 %v122_v17  ;;  %v134_v23 = vand.u32 2147483648, %v122_v17  ;;  %vm128_vm3 = vweird.f32 %v122_v17  ;;  %v132_v24 = vand.u32 2147483647, %v122_v17 }
  0x9b   :  { %v135_v26 = vor.u32 1.1754944e-38, %v134_v23  ;;  %vm133_vm5 = vcmp.eq.f32.partialorder %v132_v24, 8.507059e+37 }
  0x9d   :  { %140 = vrot.lane.b32.xlu0 %v93_v14, %s325_s1 }
  0x9f   :  { %v262_v18 = vpop.eup %261 }
  0xa0   :  { %v124_v19 = vmul.f32 %v262_v18, %v122_v17  ;;  %vm129_vm2 = vweird.f32 %v262_v18 }
  0xa1   :  { %vm130_vm4 = vmor %vm128_vm3, %vm129_vm2 }
  0xa2   :  { %v125_v20 = vsub.f32 1.0, %v124_v19 }
  0xa4   :  { %v126_v21 = vmul.f32 %v262_v18, %v125_v20 }
  0xa6   :  { %v127_v22 = vadd.f32 %v262_v18, %v126_v21 }
  0xa8   :  { %v131_v25 = vsel %vm130_vm4, %v262_v18, %v127_v22 }
  0xa9   :  { %v136_v28 = vsel %vm133_vm5, %v135_v26, %v131_v25 }
 0x107   :  { %v146_v27 = vpop.permute.xlu0 %145 }
 0x108   :  { %v148_v29 = vmul.f32 %v146_v27, %v136_v28 }
 0x10a   :  { %150 = vrot.lane.b32.xlu1 %v148_v29, %s325_s1 }
 0x10f   :  { %v141_v30 = vpop.permute.xlu0 %140 }
 0x110   :  { %v143_v31 = vmul.f32 %v141_v30, %v136_v28 }
 0x17c   :  { %v151_v32 = vpop.permute.xlu1 %150 }
 0x17d   :  { %v153_v33 = vadd.f32 %v151_v32, %v143_v31 }
 0x17f   :  { %263 = vtanh.f32 %v153_v33 }
 0x185   :  { %v264_v34 = vpop.eup %263 }
 0x186   :  { %156 = vrot.lane.b32.xlu1 %v264_v34, %s324_s4 }
 0x1f8   :  { %v157_v39 = vpop.permute.xlu1 %156 }
 0x1f9   :  { %v159_v40 = vmul.f32 %v157_v39, %v136_v28 }
 0x1fb   :  { %161 = vrot.lane.b32.xlu2 %v159_v40, %s325_s1 }
 0x203   :  { %213 = vrot.lane.b32.xlu2 %v153_v33, %s326_s20 }
 0x255   :  { %v162_v41 = vpop.permute.xlu2 %161 }
 0x256   :  { %211 = vst.msk [vmem:[%s450_s9] sm:$0xf] %vm210_vm6, %v162_v41  ;;  %245 = vmatmul.msk.f32.vlgmr.msra.gmra.mxu2 %vm94_vm1, %v162_v41  ;;  %s222_s9 = sshll.u32 %s327_s7, 4  ;;  %s223_s9 = int_to_ptr.vmem [resolvable:$true] %s222_s9 }
 0x25d   :  { %v214_v42 = vpop.permute.xlu2 %213 }
 0x25e   :  { %216 = vst.msk [vmem:[%s451_s10] sm:$0xf] %vm210_vm6, %v214_v42 }
 0x2d9   :  { %v182_v44 = vpop.f32.mrf.mxu2 }
 0x2da   :  { %v183_v45 = vadd.f32 %v256_v43, %v182_v44 }
 0x2dc   :  { %v246_v46 = vmul.f32 -1.442695, %v183_v45 }
 0x2de   :  { %265 = vpow2.f32 %v246_v46 }
 0x2e4   :  { %v266_v47 = vpop.eup %265 }
 0x2e5   :  { %v188_v48 = vadd.f32 1.0, %v266_v47 }
 0x2e7   :  { %267 = vrcp.f32 %v188_v48  ;;  %v200_v52 = vand.u32 2147483648, %v188_v48  ;;  %v198_v54 = vand.u32 2147483647, %v188_v48  ;;  %vm194_vm8 = vweird.f32 %v188_v48 }
 0x2e9   :  { %v201_v56 = vor.u32 1.1754944e-38, %v200_v52  ;;  %vm199_vm10 = vcmp.eq.f32.partialorder %v198_v54, 8.507059e+37 }
 0x2ed   :  { %v268_v49 = vpop.eup %267 }
 0x2ee   :  { %v190_v50 = vmul.f32 %v268_v49, %v188_v48  ;;  %vm195_vm7 = vweird.f32 %v268_v49 }
 0x2ef   :  { %vm196_vm9 = vmor %vm194_vm8, %vm195_vm7 }
 0x2f0   :  { %v191_v51 = vsub.f32 1.0, %v190_v50 }
 0x2f2   :  { %v192_v53 = vmul.f32 %v268_v49, %v191_v51 }
 0x2f4   :  { %v193_v55 = vadd.f32 %v268_v49, %v192_v53 }
 0x2f6   :  { %v197_v57 = vsel %vm196_vm9, %v268_v49, %v193_v55 }
 0x2f7   :  { %v202_v58 = vsel %vm199_vm10, %v201_v56, %v197_v57 }
 0x2f8   :  { %v247_v59 = vadd.f32 -0.5, %v202_v58 }
 0x2fa   :  { %v205_v60 = vmul.f32 0.999999, %v247_v59 }
 0x2fc   :  { %v206_v61 = vadd.f32 0.5, %v205_v60 }
 0x2fe   :  { %208 = vst.msk [vmem:[#allocation5] sm:$0xf] %vm207_vm11, %v206_v61 }
 0x2ff   :  { %227 = dma.vmem_to_hbm [thread:$0]  %s223_s9, 64, %s225_s26, [#allocation4]  }
 0x300   :  { %319 = dma.done.wait [#allocation4], 64  }
 0x301   :  { %320 = vsyncadd [#allocation4], 4294967232 }
 0x302   :  { %240 = vsyncpa [#allocation3], 1 }
 0x303   :  { %241 = vsyncpa [#allocation4], 1 }

</bundles_post_ra>
